<compile_context>
chip_gen: v6e
topology: v6e:2x2x1
jax: 0.10.0
libtpu: 0.0.40
codegen_flags: <defaults>
</compile_context>

<pallas_src>
import jax
import jax.numpy as jnp
from jax.experimental import pallas as pl
from jax.experimental.pallas import tpu as pltpu


def _linear_hardsigmoid_kernel(x_ref, w_ref, b_ref, o_ref):
    # x_ref: (Bt, IN)  w_ref: (IN, OUT)  b_ref: (1, OUT)  o_ref: (Bt, OUT)
    # Params are pre-folded, so the whole op is: clamp(x @ w + b, 0, 1).
    x = x_ref[...]
    w = w_ref[...]
    out = b_ref[...]                     # (1, OUT) -> broadcasts over rows
    in_dim = x_ref.shape[1]
    # IN == 2: static unroll as VPU broadcast MACs (skip the MXU entirely).
    for k in range(in_dim):
        out = out + x[:, k:k + 1] * w[k:k + 1, :]
    out = jnp.minimum(jnp.maximum(out, 0.0), 1.0)
    o_ref[...] = out.astype(o_ref.dtype)


def prepare_params(weight, bias):
    """One-time param prep. weight: (OUT, IN) PyTorch layout, bias: (OUT,).

    Returns (w_folded, b_folded) with the hard-sigmoid affine folded in:
      w_folded: (IN, OUT) = W.T / 6
      b_folded: (1, OUT)  = (b + 3) / 6
    """
    w_folded = (weight.T / 6.0).astype(jnp.float32)
    b_folded = ((bias + 3.0) / 6.0).reshape(1, -1).astype(jnp.float32)
    return w_folded, b_folded


def linear_hardsigmoid(x, w_folded, b_folded, *, block_b=4096):
    """x: (B, IN) f32; w_folded: (IN, OUT); b_folded: (1, OUT)."""
    B, IN = x.shape
    OUT = w_folded.shape[1]

    if B <= block_b:
        # Single block: everything fits trivially in VMEM -> no grid, no
        # pipeline bookkeeping.
        return pl.pallas_call(
            _linear_hardsigmoid_kernel,
            out_shape=jax.ShapeDtypeStruct((B, OUT), x.dtype),
            in_specs=[
                pl.BlockSpec(memory_space=pltpu.MemorySpace.VMEM),
                pl.BlockSpec(memory_space=pltpu.MemorySpace.VMEM),
                pl.BlockSpec(memory_space=pltpu.MemorySpace.VMEM),
            ],
            out_specs=pl.BlockSpec(memory_space=pltpu.MemorySpace.VMEM),
        )(x, w_folded, b_folded)

    # Large batch: tile B with big blocks on a 1-D "parallel" grid (amortizes
    # per-step overhead, shards across 2 TCs on v7x, HBM-BW bound).
    return pl.pallas_call(
        _linear_hardsigmoid_kernel,
        out_shape=jax.ShapeDtypeStruct((B, OUT), x.dtype),
        grid=(pl.cdiv(B, block_b),),
        in_specs=[
            pl.BlockSpec((block_b, IN), lambda i: (i, 0)),
            pl.BlockSpec((IN, OUT), lambda i: (0, 0)),
            pl.BlockSpec((1, OUT), lambda i: (0, 0)),
        ],
        out_specs=pl.BlockSpec((block_b, OUT), lambda i: (i, 0)),
        compiler_params=pltpu.CompilerParams(
            dimension_semantics=("parallel",)),
    )(x, w_folded, b_folded)


if __name__ == "__main__":
    key = jax.random.PRNGKey(0)
    k_x, k_w, k_b = jax.random.split(key, 3)

    B, IN, OUT = 2, 2, 4

    # Deterministic "parameters" (nn.Linear(2, 4, bias=True) shapes).
    bound = 1.0 / (IN ** 0.5)
    weight = jax.random.uniform(k_w, (OUT, IN), jnp.float32, -bound, bound)
    bias = jax.random.uniform(k_b, (OUT,), jnp.float32, -bound, bound)

    x = jax.random.normal(k_x, (B, IN), jnp.float32)

    # One-time parameter preparation (transpose + affine fold).
    w_folded, b_folded = prepare_params(weight, bias)

    out = linear_hardsigmoid(x, w_folded, b_folded)
    jax.block_until_ready(out)

    # Reference check in plain JAX (original op chain).
    ref = jnp.clip(x @ weight.T + bias + 3.0, 0.0, 6.0) / 6.0
    assert jnp.allclose(out, ref, atol=1e-6), (out, ref)

    # Also exercise the tiled large-batch path (still tiny / fast).
    B2 = 1536
    x2 = jax.random.normal(jax.random.PRNGKey(1), (B2, IN), jnp.float32)
    out2 = linear_hardsigmoid(x2, w_folded, b_folded, block_b=512)
    jax.block_until_ready(out2)
    ref2 = jnp.clip(x2 @ weight.T + bias + 3.0, 0.0, 6.0) / 6.0
    assert jnp.allclose(out2, ref2, atol=1e-6), "tiled path mismatch"

    print("KERNEL_OK")
</pallas_src>

<mosaic_0001>
module attributes {stable_mosaic.version = 11 : i64} {
  func.func @_linear_hardsigmoid_kernel(%arg0: memref<2x2xf32, #tpu.memory_space<vmem>>, %arg1: memref<2x4xf32, #tpu.memory_space<vmem>>, %arg2: memref<1x4xf32, #tpu.memory_space<vmem>>, %arg3: memref<2x4xf32, #tpu.memory_space<vmem>>) attributes {dimension_semantics = [], scalar_prefetch = 0 : i64, scratch_operands = 0 : i64, tpu.core_type = #tpu.core_type<tc>} {
    %c0 = arith.constant 0 : index
    %c0_0 = arith.constant 0 : index
    %0 = vector.load %arg0[%c0, %c0_0] : memref<2x2xf32, #tpu.memory_space<vmem>>, vector<2x2xf32>
    %c0_1 = arith.constant 0 : index
    %c0_2 = arith.constant 0 : index
    %1 = vector.load %arg1[%c0_1, %c0_2] : memref<2x4xf32, #tpu.memory_space<vmem>>, vector<2x4xf32>
    %c0_3 = arith.constant 0 : index
    %c0_4 = arith.constant 0 : index
    %2 = vector.load %arg2[%c0_3, %c0_4] : memref<1x4xf32, #tpu.memory_space<vmem>>, vector<1x4xf32>
    %3 = vector.extract_strided_slice %0 {offsets = [0, 0], sizes = [2, 1], strides = [1, 1]} : vector<2x2xf32> to vector<2x1xf32>
    %4 = vector.extract_strided_slice %1 {offsets = [0, 0], sizes = [1, 4], strides = [1, 1]} : vector<2x4xf32> to vector<1x4xf32>
    %5 = vector.broadcast %3 : vector<2x1xf32> to vector<2x4xf32>
    %6 = vector.broadcast %4 : vector<1x4xf32> to vector<2x4xf32>
    %7 = arith.mulf %5, %6 : vector<2x4xf32>
    %8 = vector.broadcast %2 : vector<1x4xf32> to vector<2x4xf32>
    %9 = arith.addf %8, %7 : vector<2x4xf32>
    %10 = vector.extract_strided_slice %0 {offsets = [0, 1], sizes = [2, 1], strides = [1, 1]} : vector<2x2xf32> to vector<2x1xf32>
    %11 = vector.extract_strided_slice %1 {offsets = [1, 0], sizes = [1, 4], strides = [1, 1]} : vector<2x4xf32> to vector<1x4xf32>
    %12 = vector.broadcast %10 : vector<2x1xf32> to vector<2x4xf32>
    %13 = vector.broadcast %11 : vector<1x4xf32> to vector<2x4xf32>
    %14 = arith.mulf %12, %13 : vector<2x4xf32>
    %15 = arith.addf %9, %14 : vector<2x4xf32>
    %cst = arith.constant 0.000000e+00 : f32
    %16 = vector.broadcast %cst : f32 to vector<2x4xf32>
    %17 = arith.maximumf %15, %16 : vector<2x4xf32>
    %cst_5 = arith.constant 1.000000e+00 : f32
    %18 = vector.broadcast %cst_5 : f32 to vector<2x4xf32>
    %19 = arith.minimumf %17, %18 : vector<2x4xf32>
    %c0_6 = arith.constant 0 : index
    %c0_7 = arith.constant 0 : index
    %20 = vector.load %arg3[%c0_6, %c0_7] : memref<2x4xf32, #tpu.memory_space<vmem>>, vector<2x4xf32>
    tpu.vector_store %arg3[%c0_6, %c0_7], %19 {strides = array<i32>} : memref<2x4xf32, #tpu.memory_space<vmem>>, vector<2x4xf32>,
    return
  }
}

</mosaic_0001>

<bundles_post_ra>
// kernel: tpu_custom_call.1
= control target key start
LH: loop header
LB: loop body
LE: loop exit
PB: predicated region body
PF: predicated region fallthrough
CT: control target
= control target key end

     0   :  { %8 = vsyncpa [#allocation3], 0  ;;  %s200_s0 = inlined_call_operand.hbm [shape: f32[2,2], index: 0, kind: input, shape index: {}]   ;;  %s201_s1 = inlined_call_operand.hbm [shape: f32[2,4], index: 1, kind: input, shape index: {}]   ;;  %s202_s2 = inlined_call_operand.vmem [shape: f32[1,4], index: 2, kind: input, shape index: {}]   ;;  %s203_s3 = inlined_call_operand.hbm [shape: f32[2,4], index: 3, kind: output, shape index: {}]  }
   0x1   :  { %9 = vsyncpa [#allocation6], 0 }
   0x2   :  { %10 = vsyncpa [#allocation4], 0  ;;  %s163_s12 = smov [#allocation2]   ;;  %s164_s14 = smov [#allocation5]  }
   0x3   :  { %s17_s13 = sshll.u32 %s163_s12, 4  ;;  %s27_s15 = sshll.u32 %s164_s14, 4  ;;  %s18_s13 = int_to_ptr.vmem [resolvable:$true] %s17_s13  ;;  %s28_s15 = int_to_ptr.vmem [resolvable:$true] %s27_s15 }
   0x4   :  { %s105_s16 = scalar_lea.vmem %s18_s13, 32  ;;  %p110_p1 = scmp.lt.s32.totalorder %s18_s13, %s18_s13 }
   0x5   :  { %p106_p0 = scmp.ne.s32.totalorder %s18_s13, %s105_s16  ;;  %p111_p2 = scmp.lt.s32.totalorder %s105_s16, %s105_s16 }
   0x7   :  { %p112_p3 = por %p111_p2, %p110_p1 }
   0x9   :  { %p113_p4 = pnand %p112_p3, %p106_p0 }
   0xb   :  { %116 = shalt.err (!%p113_p4)
}
   0xc   :  { %20 = dma.hbm_to_vmem [thread:$0]  %s200_s0, 32, %s18_s13, [#allocation3]  }
   0xd   :  { %s125_s19 = scalar_lea.vmem %s28_s15, 32  ;;  %p130_p6 = scmp.lt.s32.totalorder %s28_s15, %s28_s15 }
   0xe   :  { %p126_p5 = scmp.ne.s32.totalorder %s28_s15, %s125_s19  ;;  %p131_p7 = scmp.lt.s32.totalorder %s125_s19, %s125_s19 }
  0x10   :  { %p132_p8 = por %p131_p7, %p130_p6 }
  0x12   :  { %p133_p9 = pnand %p132_p8, %p126_p5 }
  0x14   :  { %136 = shalt.err (!%p133_p9)
}
  0x15   :  { %30 = dma.hbm_to_vmem [thread:$0]  %s201_s1, 32, %s28_s15, [#allocation6]  }
  0x16   :  { %157 = dma.done.wait [#allocation3], 32  }
  0x17   :  { %158 = vsyncadd [#allocation3], 4294967264 }
  0x18   :  { %159 = dma.done.wait [#allocation6], 32  }
  0x19   :  { %160 = vsyncadd [#allocation6], 4294967264  ;;  %v165_v0 = vmov 0   ;;  %v39_v1 = vld [vmem:[#allocation2] sm:$0x3]  ;;  %v166_v2 = vmov 1   ;;  %v47_v3 = vlaneseq }
  0x1a   :  { %95 = vset.pattern.permute.xlu0 %v165_v0  ;;  %v40_v6 = vld [vmem:[#allocation5] sm:$0x3]  ;;  %v89_v12 = vld [vmem:[%s202_s2] ss:$0 sm:$0xff]  ;;  %s167_s22 = smov [#allocation7]   ;;  %vm71_vm0 = vcmask 25600  }
  0x1b   :  { %44 = vperm.xlu0 %95, %v39_v1   ;;  %v48_v4 = vshrl.u32 %v47_v3, 7  ;;  %s79_s23 = sshll.u32 %s167_s22, 4  ;;  %s80_s23 = int_to_ptr.vmem [resolvable:$true] %s79_s23 }
  0x1c   :  { %s137_s24 = scalar_lea.vmem %s80_s23, 32  ;;  %p142_p11 = scmp.lt.s32.totalorder %s80_s23, %s80_s23 }
  0x1d   :  { %v49_v5 = vsub.s32 0, %v48_v4  ;;  %v65_v8 = vsub.s32 1, %v48_v4  ;;  %p138_p10 = scmp.ne.s32.totalorder %s80_s23, %s137_s24  ;;  %p143_p12 = scmp.lt.s32.totalorder %s137_s24, %s137_s24 }
  0x1f   :  { %96 = vset.pattern.permute.xlu0 %v166_v2  ;;  %v50_v7 = vrot.slane %v40_v6, %v49_v5  ;;  %v66_v11 = vrot.slane %v40_v6, %v65_v8  ;;  %p144_p13 = por %p143_p12, %p142_p11 }
  0x20   :  { %60 = vperm.xlu0 %96, %v39_v1  }
  0x21   :  { %p145_p0 = pnand %p144_p13, %p138_p10 }
  0x96   :  { %v45_v9 = vpop.permute.xlu0 %44 }
  0x97   :  { %v51_v10 = vmul.f32 %v50_v7, %v45_v9 }
  0x99   :  { %v58_v14 = vadd.f32 %v89_v12, %v51_v10 }
  0x9b   :  { %v61_v13 = vpop.permute.xlu0 %60 }
  0x9c   :  { %v67_v15 = vmul.f32 %v66_v11, %v61_v13 }
  0x9e   :  { %v68_v16 = vadd.f32 %v67_v15, %v58_v14 }
  0xa0   :  { %v69_v17 = vmax.f32 %v68_v16, 0.0 }
  0xa2   :  { %v70_v18 = vmin.f32 %v69_v17, 1.0 }
  0xa4   :  { %72 = vst.msk [vmem:[#allocation7] sm:$0x3] %vm71_vm0, %v70_v18 }
  0xa5   :  { %148 = shalt.err (!%p145_p0)
}
  0xa6   :  { %82 = dma.vmem_to_hbm [thread:$0]  %s80_s23, 32, %s203_s3, [#allocation4]  }
  0xa7   :  { %161 = dma.done.wait [#allocation4], 32  }
  0xa8   :  { %162 = vsyncadd [#allocation4], 4294967264 }
  0xa9   :  { %86 = vsyncpa [#allocation3], 1 }
  0xaa   :  { %87 = vsyncpa [#allocation6], 1 }
  0xab   :  { %88 = vsyncpa [#allocation4], 1 }

</bundles_post_ra>
